<compile_context>
chip_gen: v6e
topology: v6e:2x2x1
jax: 0.10.0
libtpu: 0.0.40
codegen_flags: <defaults>
</compile_context>

<pallas_src>
import jax
import jax.numpy as jnp
from jax.experimental import pallas as pl
from jax.experimental.pallas import tpu as pltpu

SUBLANE = 8  # f32 sublane group size


def make_rnn_kernel(T, B_pad):
    """Build the kernel with static T, B_pad baked in (full unroll)."""

    def kernel(x_ref, wih_ref, whh_ref, b_ref, wout_ref, bout_ref, out_ref):
        # x_ref    : (T*B_pad, D) bf16  time-major rows, batch padded to 8
        # wih_ref  : (D, H)       bf16  transposed weight_ih
        # whh_ref  : (H, H)       bf16  transposed weight_hh
        # b_ref    : (1, H)       f32   fused bias b_ih + b_hh
        # wout_ref : (H, C)       f32   transposed Linear weight
        # bout_ref : (1, C)       f32   T * b_out (bias pre-summed over time)
        # out_ref  : (B_pad, C)   f32   log-probs (rows >= real B are padding)

        # --- Hoisted input projection: ONE bf16 MXU pass for all timesteps,
        #     f32 accumulation, fused bias folded in. ------------------------
        xproj = (
            jnp.dot(x_ref[...], wih_ref[...], preferred_element_type=jnp.float32)
            + b_ref[...]
        )  # (T*B_pad, H) f32

        # Recurrent weight loaded once, held in vregs across the unrolled loop.
        whh = whh_ref[...]  # (H, H) bf16

        # --- Recurrence (fully unrolled; h, h_sum live in vregs). ------------
        # h_0 = 0 (PyTorch default) => step 0 needs no recurrent matmul.
        h = jnp.tanh(xproj[0:B_pad])          # (B_pad, H) f32
        h_sum = h
        for t in range(1, T):
            # Static, sublane-aligned slice (B_pad == 8): pure vreg select.
            x_t = xproj[t * B_pad:(t + 1) * B_pad]
            pre = x_t + jnp.dot(
                h.astype(jnp.bfloat16), whh, preferred_element_type=jnp.float32
            )
            h = jnp.tanh(pre)
            h_sum = h_sum + h

        # --- Output head (f32, once):
        #     sum_t (h_t @ W_out^T + b_out) = (sum_t h_t) @ W_out^T + T*b_out.
        logits = (
            jnp.dot(h_sum, wout_ref[...], preferred_element_type=jnp.float32)
            + bout_ref[...]
        )  # (B_pad, C)

        # --- LogSoftmax over the class axis (dim=1). --------------------------
        m = jnp.max(logits, axis=1, keepdims=True)
        shifted = logits - m
        lse = jnp.log(jnp.sum(jnp.exp(shifted), axis=1, keepdims=True))
        out_ref[...] = (shifted - lse).astype(out_ref.dtype)

    return kernel


def rnn_forward(x, w_ih, w_hh, b_ih, b_hh, w_out, b_out):
    """x: (T, B, D) f32; weights in PyTorch convention (out_features, in_features)."""
    T, B, D = x.shape
    H = w_ih.shape[0]
    C = w_out.shape[0]
    B_pad = max(SUBLANE, ((B + SUBLANE - 1) // SUBLANE) * SUBLANE)

    # Wrapper-side layout plumbing (not compute hoisting):
    #   * pad batch with zero rows so per-step slices are whole sublane groups,
    #   * pre-transpose weights, fuse/fold biases, flatten time,
    #   * cast the MXU operands that sit on the recurrence path to bf16.
    x_pad = jnp.zeros((T, B_pad, D), jnp.float32).at[:, :B, :].set(x)
    x_flat = x_pad.reshape(T * B_pad, D).astype(jnp.bfloat16)      # (T*B_pad, D)
    wih_t = w_ih.T.astype(jnp.bfloat16)                            # (D, H)
    whh_t = w_hh.T.astype(jnp.bfloat16)                            # (H, H)
    wout_t = w_out.T.astype(jnp.float32)                           # (H, C)
    b_fused = (b_ih + b_hh).reshape(1, H).astype(jnp.float32)      # (1, H)
    bout_scaled = (float(T) * b_out).reshape(1, C).astype(jnp.float32)

    vmem = pl.BlockSpec(memory_space=pltpu.MemorySpace.VMEM)

    # Single-invocation kernel (grid=()): tiny footprint, strictly serial
    # recurrence -> no grid, no megacore split.
    out_pad = pl.pallas_call(
        make_rnn_kernel(T, B_pad),
        out_shape=jax.ShapeDtypeStruct((B_pad, C), jnp.float32),
        in_specs=[vmem] * 6,
        out_specs=vmem,
    )(x_flat, wih_t, whh_t, b_fused, wout_t, bout_scaled)

    return out_pad[:B]


def _reference_f32(x, w_ih, w_hh, b_ih, b_hh, w_out, b_out):
    """Pure-f32 JAX reference mirroring the PyTorch forward."""
    T, B, D = x.shape
    H = w_ih.shape[0]
    h = jnp.zeros((B, H), jnp.float32)
    outs = []
    for t in range(T):
        h = jnp.tanh(x[t] @ w_ih.T + b_ih + h @ w_hh.T + b_hh)
        outs.append(h)
    output = jnp.stack(outs, axis=0)              # (T, B, H)
    lin = output @ w_out.T + b_out                # (T, B, 5)
    summed = jnp.sum(lin, axis=0)                 # (B, 5)
    return jax.nn.log_softmax(summed, axis=1)


def _reference_bf16(x, w_ih, w_hh, b_ih, b_hh, w_out, b_out):
    """Reference that mirrors the kernel's mixed-precision choices exactly."""
    T, B, D = x.shape
    H = w_ih.shape[0]
    xb = x.astype(jnp.bfloat16)
    wih_t = w_ih.T.astype(jnp.bfloat16)
    whh_t = w_hh.T.astype(jnp.bfloat16)
    b_fused = (b_ih + b_hh)[None, :]
    h = jnp.zeros((B, H), jnp.float32)
    h_sum = jnp.zeros((B, H), jnp.float32)
    for t in range(T):
        pre = jnp.dot(xb[t], wih_t, preferred_element_type=jnp.float32) + b_fused
        if t > 0:
            pre = pre + jnp.dot(
                h.astype(jnp.bfloat16), whh_t, preferred_element_type=jnp.float32
            )
        h = jnp.tanh(pre)
        h_sum = h_sum + h
    logits = jnp.dot(h_sum, w_out.T, preferred_element_type=jnp.float32) + T * b_out
    return jax.nn.log_softmax(logits, axis=1)


if __name__ == "__main__":
    # Small shapes consistent with the module: seq=8, batch=2, input_dim=16, h=32
    T, B, D, H, C = 8, 2, 16, 32, 5

    key = jax.random.PRNGKey(0)
    ks = jax.random.split(key, 8)
    bound = 1.0 / jnp.sqrt(H)   # PyTorch nn.RNN / nn.Linear uniform init bound

    x = jax.random.normal(ks[0], (T, B, D), dtype=jnp.float32)
    w_ih = jax.random.uniform(ks[1], (H, D), jnp.float32, -bound, bound)
    w_hh = jax.random.uniform(ks[2], (H, H), jnp.float32, -bound, bound)
    b_ih = jax.random.uniform(ks[3], (H,), jnp.float32, -bound, bound)
    b_hh = jax.random.uniform(ks[4], (H,), jnp.float32, -bound, bound)
    w_out = jax.random.uniform(ks[5], (C, H), jnp.float32, -bound, bound)
    b_out = jax.random.uniform(ks[6], (C,), jnp.float32, -bound, bound)

    out = rnn_forward(x, w_ih, w_hh, b_ih, b_hh, w_out, b_out)
    out = jax.block_until_ready(out)
    assert out.shape == (B, C)

    # Implementation check: must match a reference with identical bf16 casts.
    ref_bf16 = _reference_bf16(x, w_ih, w_hh, b_ih, b_hh, w_out, b_out)
    assert jnp.allclose(out, ref_bf16, atol=1e-3, rtol=0.0), (out, ref_bf16)

    # Semantic check vs. the full-f32 PyTorch-equivalent forward (tolerance
    # accounts for bf16 MXU operands on the recurrence path).
    ref_f32 = _reference_f32(x, w_ih, w_hh, b_ih, b_hh, w_out, b_out)
    assert jnp.allclose(out, ref_f32, atol=1e-1, rtol=0.0), (out, ref_f32)

    print("KERNEL_OK")
</pallas_src>

<mosaic_0001>
module attributes {stable_mosaic.version = 11 : i64} {
  func.func @kernel(%arg0: memref<64x16xbf16, #tpu.memory_space<vmem>>, %arg1: memref<16x32xbf16, #tpu.memory_space<vmem>>, %arg2: memref<32x32xbf16, #tpu.memory_space<vmem>>, %arg3: memref<1x32xf32, #tpu.memory_space<vmem>>, %arg4: memref<32x5xf32, #tpu.memory_space<vmem>>, %arg5: memref<1x5xf32, #tpu.memory_space<vmem>>, %arg6: memref<8x5xf32, #tpu.memory_space<vmem>>) attributes {dimension_semantics = [], scalar_prefetch = 0 : i64, scratch_operands = 0 : i64, tpu.core_type = #tpu.core_type<tc>} {
    %c0 = arith.constant 0 : index
    %c0_0 = arith.constant 0 : index
    %0 = vector.load %arg0[%c0, %c0_0] : memref<64x16xbf16, #tpu.memory_space<vmem>>, vector<64x16xbf16>
    %c0_1 = arith.constant 0 : index
    %c0_2 = arith.constant 0 : index
    %1 = vector.load %arg1[%c0_1, %c0_2] : memref<16x32xbf16, #tpu.memory_space<vmem>>, vector<16x32xbf16>
    %cst = arith.constant dense<0.000000e+00> : vector<64x32xf32>
    %2 = tpu.matmul %0, %1, %cst {dimension_numbers = #tpu.dot_dimension_numbers<[1], [0], [0], [1], [0, 0, 1, 1], [], []>} : vector<64x16xbf16>, vector<16x32xbf16>, vector<64x32xf32> -> vector<64x32xf32>
    %c0_3 = arith.constant 0 : index
    %c0_4 = arith.constant 0 : index
    %3 = vector.load %arg3[%c0_3, %c0_4] : memref<1x32xf32, #tpu.memory_space<vmem>>, vector<1x32xf32>
    %4 = vector.broadcast %3 : vector<1x32xf32> to vector<64x32xf32>
    %5 = arith.addf %2, %4 : vector<64x32xf32>
    %c0_5 = arith.constant 0 : index
    %c0_6 = arith.constant 0 : index
    %6 = vector.load %arg2[%c0_5, %c0_6] : memref<32x32xbf16, #tpu.memory_space<vmem>>, vector<32x32xbf16>
    %7 = vector.extract_strided_slice %5 {offsets = [0, 0], sizes = [8, 32], strides = [1, 1]} : vector<64x32xf32> to vector<8x32xf32>
    %8 = math.tanh %7 : vector<8x32xf32>
    %9 = vector.extract_strided_slice %5 {offsets = [8, 0], sizes = [8, 32], strides = [1, 1]} : vector<64x32xf32> to vector<8x32xf32>
    %10 = arith.truncf %8 : vector<8x32xf32> to vector<8x32xbf16>
    %cst_7 = arith.constant dense<0.000000e+00> : vector<8x32xf32>
    %11 = tpu.matmul %10, %6, %cst_7 {dimension_numbers = #tpu.dot_dimension_numbers<[1], [0], [0], [1], [0, 0, 1, 1], [], []>} : vector<8x32xbf16>, vector<32x32xbf16>, vector<8x32xf32> -> vector<8x32xf32>
    %12 = arith.addf %9, %11 : vector<8x32xf32>
    %13 = math.tanh %12 : vector<8x32xf32>
    %14 = arith.addf %8, %13 : vector<8x32xf32>
    %15 = vector.extract_strided_slice %5 {offsets = [16, 0], sizes = [8, 32], strides = [1, 1]} : vector<64x32xf32> to vector<8x32xf32>
    %16 = arith.truncf %13 : vector<8x32xf32> to vector<8x32xbf16>
    %cst_8 = arith.constant dense<0.000000e+00> : vector<8x32xf32>
    %17 = tpu.matmul %16, %6, %cst_8 {dimension_numbers = #tpu.dot_dimension_numbers<[1], [0], [0], [1], [0, 0, 1, 1], [], []>} : vector<8x32xbf16>, vector<32x32xbf16>, vector<8x32xf32> -> vector<8x32xf32>
    %18 = arith.addf %15, %17 : vector<8x32xf32>
    %19 = math.tanh %18 : vector<8x32xf32>
    %20 = arith.addf %14, %19 : vector<8x32xf32>
    %21 = vector.extract_strided_slice %5 {offsets = [24, 0], sizes = [8, 32], strides = [1, 1]} : vector<64x32xf32> to vector<8x32xf32>
    %22 = arith.truncf %19 : vector<8x32xf32> to vector<8x32xbf16>
    %cst_9 = arith.constant dense<0.000000e+00> : vector<8x32xf32>
    %23 = tpu.matmul %22, %6, %cst_9 {dimension_numbers = #tpu.dot_dimension_numbers<[1], [0], [0], [1], [0, 0, 1, 1], [], []>} : vector<8x32xbf16>, vector<32x32xbf16>, vector<8x32xf32> -> vector<8x32xf32>
    %24 = arith.addf %21, %23 : vector<8x32xf32>
    %25 = math.tanh %24 : vector<8x32xf32>
    %26 = arith.addf %20, %25 : vector<8x32xf32>
    %27 = vector.extract_strided_slice %5 {offsets = [32, 0], sizes = [8, 32], strides = [1, 1]} : vector<64x32xf32> to vector<8x32xf32>
    %28 = arith.truncf %25 : vector<8x32xf32> to vector<8x32xbf16>
    %cst_10 = arith.constant dense<0.000000e+00> : vector<8x32xf32>
    %29 = tpu.matmul %28, %6, %cst_10 {dimension_numbers = #tpu.dot_dimension_numbers<[1], [0], [0], [1], [0, 0, 1, 1], [], []>} : vector<8x32xbf16>, vector<32x32xbf16>, vector<8x32xf32> -> vector<8x32xf32>
    %30 = arith.addf %27, %29 : vector<8x32xf32>
    %31 = math.tanh %30 : vector<8x32xf32>
    %32 = arith.addf %26, %31 : vector<8x32xf32>
    %33 = vector.extract_strided_slice %5 {offsets = [40, 0], sizes = [8, 32], strides = [1, 1]} : vector<64x32xf32> to vector<8x32xf32>
    %34 = arith.truncf %31 : vector<8x32xf32> to vector<8x32xbf16>
    %cst_11 = arith.constant dense<0.000000e+00> : vector<8x32xf32>
    %35 = tpu.matmul %34, %6, %cst_11 {dimension_numbers = #tpu.dot_dimension_numbers<[1], [0], [0], [1], [0, 0, 1, 1], [], []>} : vector<8x32xbf16>, vector<32x32xbf16>, vector<8x32xf32> -> vector<8x32xf32>
    %36 = arith.addf %33, %35 : vector<8x32xf32>
    %37 = math.tanh %36 : vector<8x32xf32>
    %38 = arith.addf %32, %37 : vector<8x32xf32>
    %39 = vector.extract_strided_slice %5 {offsets = [48, 0], sizes = [8, 32], strides = [1, 1]} : vector<64x32xf32> to vector<8x32xf32>
    %40 = arith.truncf %37 : vector<8x32xf32> to vector<8x32xbf16>
    %cst_12 = arith.constant dense<0.000000e+00> : vector<8x32xf32>
    %41 = tpu.matmul %40, %6, %cst_12 {dimension_numbers = #tpu.dot_dimension_numbers<[1], [0], [0], [1], [0, 0, 1, 1], [], []>} : vector<8x32xbf16>, vector<32x32xbf16>, vector<8x32xf32> -> vector<8x32xf32>
    %42 = arith.addf %39, %41 : vector<8x32xf32>
    %43 = math.tanh %42 : vector<8x32xf32>
    %44 = arith.addf %38, %43 : vector<8x32xf32>
    %45 = vector.extract_strided_slice %5 {offsets = [56, 0], sizes = [8, 32], strides = [1, 1]} : vector<64x32xf32> to vector<8x32xf32>
    %46 = arith.truncf %43 : vector<8x32xf32> to vector<8x32xbf16>
    %cst_13 = arith.constant dense<0.000000e+00> : vector<8x32xf32>
    %47 = tpu.matmul %46, %6, %cst_13 {dimension_numbers = #tpu.dot_dimension_numbers<[1], [0], [0], [1], [0, 0, 1, 1], [], []>} : vector<8x32xbf16>, vector<32x32xbf16>, vector<8x32xf32> -> vector<8x32xf32>
    %48 = arith.addf %45, %47 : vector<8x32xf32>
    %49 = math.tanh %48 : vector<8x32xf32>
    %50 = arith.addf %44, %49 : vector<8x32xf32>
    %c0_14 = arith.constant 0 : index
    %c0_15 = arith.constant 0 : index
    %51 = vector.load %arg4[%c0_14, %c0_15] : memref<32x5xf32, #tpu.memory_space<vmem>>, vector<32x5xf32>
    %cst_16 = arith.constant dense<0.000000e+00> : vector<8x5xf32>
    %52 = tpu.matmul %50, %51, %cst_16 {dimension_numbers = #tpu.dot_dimension_numbers<[1], [0], [0], [1], [0, 0, 1, 1], [], []>} : vector<8x32xf32>, vector<32x5xf32>, vector<8x5xf32> -> vector<8x5xf32>
    %c0_17 = arith.constant 0 : index
    %c0_18 = arith.constant 0 : index
    %53 = vector.load %arg5[%c0_17, %c0_18] : memref<1x5xf32, #tpu.memory_space<vmem>>, vector<1x5xf32>
    %54 = vector.broadcast %53 : vector<1x5xf32> to vector<8x5xf32>
    %55 = arith.addf %52, %54 : vector<8x5xf32>
    %cst_19 = arith.constant dense<0xFF800000> : vector<8xf32>
    %56 = vector.multi_reduction <maximumf>, %55, %cst_19 [1] : vector<8x5xf32> to vector<8xf32>
    %57 = vector.shape_cast %56 : vector<8xf32> to vector<8x1xf32>
    %58 = vector.broadcast %57 : vector<8x1xf32> to vector<8x5xf32>
    %59 = arith.subf %55, %58 : vector<8x5xf32>
    %60 = math.exp %59 : vector<8x5xf32>
    %cst_20 = arith.constant dense<0.000000e+00> : vector<8xf32>
    %61 = vector.multi_reduction <add>, %60, %cst_20 [1] : vector<8x5xf32> to vector<8xf32>
    %62 = vector.shape_cast %61 : vector<8xf32> to vector<8x1xf32>
    %63 = math.log %62 : vector<8x1xf32>
    %64 = vector.broadcast %63 : vector<8x1xf32> to vector<8x5xf32>
    %65 = arith.subf %59, %64 : vector<8x5xf32>
    %c0_21 = arith.constant 0 : index
    %c0_22 = arith.constant 0 : index
    %66 = vector.load %arg6[%c0_21, %c0_22] : memref<8x5xf32, #tpu.memory_space<vmem>>, vector<8x5xf32>
    tpu.vector_store %arg6[%c0_21, %c0_22], %65 {strides = array<i32>} : memref<8x5xf32, #tpu.memory_space<vmem>>, vector<8x5xf32>,
    return
  }
}

</mosaic_0001>

<bundles_post_ra>
// kernel: tpu_custom_call.1
= control target key start
LH: loop header
LB: loop body
LE: loop exit
PB: predicated region body
PF: predicated region fallthrough
CT: control target
= control target key end

     0   :  { %vm68_vm0 = vcmask 130048   ;;  %s946_s0 = inlined_call_operand.vmem [shape: bf16[64,16], index: 0, kind: input, shape index: {}]   ;;  %s947_s1 = inlined_call_operand.vmem [shape: bf16[16,32], index: 1, kind: input, shape index: {}]   ;;  %s948_s2 = inlined_call_operand.vmem [shape: bf16[32,32], index: 2, kind: input, shape index: {}]   ;;  %s949_s3 = inlined_call_operand.vmem [shape: f32[1,32], index: 3, kind: input, shape index: {}]   ;;  %s950_s4 = inlined_call_operand.vmem [shape: f32[32,5], index: 4, kind: input, shape index: {}]   ;;  %s951_s5 = inlined_call_operand.vmem [shape: f32[1,5], index: 5, kind: input, shape index: {}]   ;;  %s952_s6 = inlined_call_operand.hbm [shape: f32[8,5], index: 6, kind: output, shape index: {}]  }
   0x1   :  { %v737_v0 = vld [vmem:[%s947_s1] sm:$0xff]   ;;  %v739_v2 = vld [vmem:[%s946_s0 + $0x8] sm:$0xff]  }
   0x2   :  { %v738_v1 = vld [vmem:[%s946_s0] sm:$0xff]   ;;  %657 = vmatprep.subr.bf16.mxu0 %v737_v0 }
   0x3   :  { %658 = vmatpush3.bf16.msra.mxu0 %v737_v0  ;;  %659 = vmatprep.mubr.msk.bf16.mxu0 %vm68_vm0, %v738_v1 }
   0x4   :  { %11 = vsyncpa [#allocation3], 0  ;;  %v838_v3 = vld [vmem:[%s948_s2 + $0x8] sm:$0xff]   ;;  %v786_v4 = vmov 0.0   ;;  %vm787_vm1 = vmmov 0   ;;  %v847_v5 = vld [vmem:[%s948_s2] sm:$0xff]  }
   0x5   :  { %667 = vmatprep.subr.bf16.mxu1 %v786_v4  ;;  %671 = vmatprep.mubr.msk.bf16.mxu1 %vm787_vm1, %v786_v4  ;;  %v860_v7 = vld [vmem:[%s949_s3] ss:$0 sm:$0xff]  ;;  %vm164_vm2 = vcmask 261120   ;;  %v742_v22 = vld [vmem:[%s946_s0 + $0x10] sm:$0xff]   ;;  %v743_v23 = vld [vmem:[%s946_s0 + $0x18] sm:$0xff]   ;;  %vm577_vm3 = vcmask 39936  }
   0x6   :  { %660 = vmatmul.mubr.msk.bf16.vlgmr.msra.gmra.mxu0 %vm68_vm0, %v739_v2  ;;  %668 = vmatpush3.bf16.msra.mxu1 %v838_v3 }
   0x7   :  { %683 = vmatprep.subr.bf16.mxu0 %v786_v4  ;;  %669 = vmatprep.subr.bf16.mxu1 %v786_v4 }
   0x8   :  { %684 = vmatpush3.bf16.msra.mxu0 %v838_v3  ;;  %663 = vmatprep.mubr.msk.bf16.mxu0 %vm68_vm0, %v742_v22 }
   0x9   :  { %685 = vmatprep.subr.bf16.mxu0 %v786_v4 }
   0xa   :  { %670 = vmatpush3.bf16.msra.mxu1 %v847_v5 }
   0xb   :  { %675 = vmatprep.subr.bf16.mxu1 %v786_v4 }
   0xc   :  { %686 = vmatpush3.bf16.msra.mxu0 %v847_v5 }
   0xd   :  { %699 = vmatprep.subr.bf16.mxu0 %v786_v4 }
   0xe   :  { %664 = vmatmul.mubr.msk.bf16.gmra.mxu0 %vm68_vm0, %v743_v23 }
   0xf   :  { %687 = vmatprep.mubr.msk.bf16.mxu0 %vm787_vm1, %v786_v4 }
  0xc6   :  { %v661_v6 = vpop.f32.mrf.mxu0 }
  0xc7   :  { %v124_v24 = vadd.f32 %v661_v6, %v860_v7 }
  0xc8   :  { %v115_v8 = vpop.f32.mrf.mxu0 }
  0xc9   :  { %v116_v9 = vadd.f32 %v860_v7, %v115_v8 }
  0xca   :  { %v662_v12 = vpop.f32.mrf.mxu0 }
  0xcb   :  { %744 = vtanh.f32 %v116_v9  ;;  %v127_v38 = vadd.f32 %v662_v12, %v860_v7  ;;  %v496_v12 = vld [vmem:[%s950_s4 + $0x18] sm:$0xff] }
  0xcc   :  { %v118_v13 = vpop.f32.mrf.mxu0 }
  0xcd   :  { %v119_v14 = vadd.f32 %v860_v7, %v118_v13  ;;  %v495_v13 = vld [vmem:[%s950_s4 + $0x10] sm:$0xff] }
  0xce   :  { %v665_v34 = vpop.f32.mrf.mxu0 }
  0xcf   :  { %v140_v1 = vadd.f32 %v665_v34, %v860_v7 }
  0xd0   :  { %v131_v35 = vpop.f32.mrf.mxu0 }
  0xd1   :  { %v132_v47 = vadd.f32 %v860_v7, %v131_v35 }
  0xd2   :  { %v896_v36 = vpop.f32.mrf.mxu0 }
  0xd4   :  { %v134_v37 = vpop.f32.mrf.mxu0 }
  0xd5   :  { %v135_v56 = vadd.f32 %v860_v7, %v134_v37 }
  0xd8   :  { %v745_v10 = vpop.eup %744 }
  0xd9   :  { %v151_v11 = vpack.c.bf16 %v745_v10, %v745_v10 }
  0xdb   :  { %672 = vmatmul.mubr.msk.bf16.vlgmr.msra.gmra.mxu1 %vm164_vm2, %v151_v11 }
  0xdc   :  { %676 = vmatpush3.bf16.msra.mxu1 %v838_v3  ;;  %679 = vmatprep.mubr.msk.bf16.mxu1 %vm787_vm1, %v786_v4 }
  0xdd   :  { %677 = vmatprep.subr.bf16.mxu1 %v786_v4 }
  0xe0   :  { %678 = vmatpush3.bf16.msra.mxu1 %v847_v5 }
  0xe1   :  { %691 = vmatprep.subr.bf16.mxu1 %v786_v4 }
 0x19b   :  { %v202_v15 = vpop.f32.mrf.mxu1 }
 0x19c   :  { %v208_v16 = vadd.f32 %v202_v15, %v119_v14  ;;  %v494_v14 = vld [vmem:[%s950_s4 + $0x8] sm:$0xff]  ;;  %v493_v15 = vld [vmem:[%s950_s4] sm:$0xff]  ;;  %s788_s4 = smov [#allocation2]  }
 0x19d   :  { %v673_v17 = vpop.f32.mrf.mxu1 }
 0x19e   :  { %746 = vtanh.f32 %v208_v16  ;;  %v143_v16 = vadd.f32 %v896_v36, %v860_v7 }
 0x19f   :  { %v205_v18 = vpop.f32.mrf.mxu1 }
 0x1a1   :  { %v674_v19 = vpop.f32.mrf.mxu1 }
 0x1ab   :  { %v747_v20 = vpop.eup %746 }
 0x1ac   :  { %v211_v21 = vpack.c.bf16 %v747_v20, %v747_v20  ;;  %v210_v30 = vadd.f32 %v747_v20, %v745_v10 }
 0x1ae   :  { %680 = vmatmul.mubr.msk.bf16.vlgmr.msra.gmra.mxu1 %vm164_vm2, %v211_v21 }
 0x1af   :  { %692 = vmatpush3.bf16.msra.mxu1 %v838_v3  ;;  %695 = vmatprep.mubr.msk.bf16.mxu1 %vm787_vm1, %v786_v4 }
 0x1b0   :  { %693 = vmatprep.subr.bf16.mxu1 %v786_v4 }
 0x1b3   :  { %694 = vmatpush3.bf16.msra.mxu1 %v847_v5 }
 0x1b4   :  { %707 = vmatprep.subr.bf16.mxu1 %v786_v4 }
 0x26e   :  { %v249_v25 = vpop.f32.mrf.mxu1 }
 0x26f   :  { %v255_v26 = vadd.f32 %v249_v25, %v124_v24  ;;  %v624_v24 = vld [vmem:[%s951_s5] ss:$0 sm:$0xff]  ;;  %s597_s5 = sshll.u32 %s788_s4, 4  ;;  %s598_s5 = int_to_ptr.vmem [resolvable:$true] %s597_s5 }
 0x270   :  { %v681_v27 = vpop.f32.mrf.mxu1  ;;  %s764_s19 = scalar_lea.vmem %s598_s5, 128  ;;  %p769_p1 = scmp.lt.s32.totalorder %s598_s5, %s598_s5 }
 0x271   :  { %748 = vtanh.f32 %v255_v26  ;;  %p765_p0 = scmp.ne.s32.totalorder %s598_s5, %s764_s19  ;;  %p770_p2 = scmp.lt.s32.totalorder %s764_s19, %s764_s19 }
 0x272   :  { %v252_v28 = vpop.f32.mrf.mxu1 }
 0x273   :  { %p771_p3 = por %p770_p2, %p769_p1 }
 0x274   :  { %v682_v29 = vpop.f32.mrf.mxu1 }
 0x275   :  { %p772_p4 = pnand %p771_p3, %p765_p0 }
 0x27e   :  { %v749_v31 = vpop.eup %748 }
 0x27f   :  { %v257_v32 = vadd.f32 %v749_v31, %v210_v30  ;;  %v258_v33 = vpack.c.bf16 %v749_v31, %v749_v31 }
 0x281   :  { %688 = vmatmul.mubr.msk.bf16.vlgmr.msra.gmra.mxu0 %vm164_vm2, %v258_v33 }
 0x282   :  { %700 = vmatpush3.bf16.msra.mxu0 %v838_v3  ;;  %703 = vmatprep.mubr.msk.bf16.mxu0 %vm787_vm1, %v786_v4 }
 0x283   :  { %701 = vmatprep.subr.bf16.mxu0 %v786_v4 }
 0x286   :  { %702 = vmatpush3.bf16.msra.mxu0 %v847_v5 }
 0x287   :  { %715 = vmatprep.subr.bf16.mxu0 %v786_v4 }
 0x341   :  { %v296_v39 = vpop.f32.mrf.mxu0 }
 0x342   :  { %v302_v40 = vadd.f32 %v296_v39, %v127_v38 }
 0x343   :  { %v689_v41 = vpop.f32.mrf.mxu0 }
 0x344   :  { %750 = vtanh.f32 %v302_v40 }
 0x345   :  { %v299_v42 = vpop.f32.mrf.mxu0 }
 0x347   :  { %v690_v43 = vpop.f32.mrf.mxu0 }
 0x351   :  { %v751_v44 = vpop.eup %750 }
 0x352   :  { %v304_v45 = vadd.f32 %v751_v44, %v257_v32  ;;  %v305_v46 = vpack.c.bf16 %v751_v44, %v751_v44 }
 0x354   :  { %696 = vmatmul.mubr.msk.bf16.vlgmr.msra.gmra.mxu1 %vm164_vm2, %v305_v46 }
 0x355   :  { %708 = vmatpush3.bf16.msra.mxu1 %v838_v3  ;;  %711 = vmatprep.mubr.msk.bf16.mxu1 %vm787_vm1, %v786_v4 }
 0x356   :  { %709 = vmatprep.subr.bf16.mxu1 %v786_v4 }
 0x359   :  { %710 = vmatpush3.bf16.msra.mxu1 %v847_v5 }
 0x35a   :  { %723 = vmatprep.subr.mxu1 %v786_v4 }
 0x414   :  { %v343_v48 = vpop.f32.mrf.mxu1 }
 0x415   :  { %v349_v49 = vadd.f32 %v343_v48, %v132_v47 }
 0x416   :  { %v697_v50 = vpop.f32.mrf.mxu1 }
 0x417   :  { %752 = vtanh.f32 %v349_v49 }
 0x418   :  { %v346_v51 = vpop.f32.mrf.mxu1 }
 0x41a   :  { %v698_v52 = vpop.f32.mrf.mxu1 }
 0x424   :  { %v753_v53 = vpop.eup %752 }
 0x425   :  { %v351_v54 = vadd.f32 %v753_v53, %v304_v45  ;;  %v352_v55 = vpack.c.bf16 %v753_v53, %v753_v53 }
 0x427   :  { %704 = vmatmul.mubr.msk.bf16.vlgmr.msra.gmra.mxu0 %vm164_vm2, %v352_v55 }
 0x428   :  { %716 = vmatpush3.bf16.msra.mxu0 %v838_v3  ;;  %719 = vmatprep.mubr.msk.bf16.mxu0 %vm787_vm1, %v786_v4 }
 0x429   :  { %717 = vmatprep.subr.bf16.mxu0 %v786_v4 }
 0x42c   :  { %718 = vmatpush3.bf16.msra.mxu0 %v847_v5 }
 0x4e7   :  { %v390_v57 = vpop.f32.mrf.mxu0 }
 0x4e8   :  { %v396_v58 = vadd.f32 %v390_v57, %v135_v56 }
 0x4e9   :  { %v705_v59 = vpop.f32.mrf.mxu0 }
 0x4ea   :  { %754 = vtanh.f32 %v396_v58 }
 0x4eb   :  { %v393_v60 = vpop.f32.mrf.mxu0 }
 0x4ed   :  { %v706_v61 = vpop.f32.mrf.mxu0 }
 0x4f7   :  { %v755_v62 = vpop.eup %754 }
 0x4f8   :  { %v398_v63 = vadd.f32 %v755_v62, %v351_v54  ;;  %v399_v0 = vpack.c.bf16 %v755_v62, %v755_v62 }
 0x4fa   :  { %712 = vmatmul.mubr.msk.bf16.vlgmr.msra.gmra.mxu1 %vm164_vm2, %v399_v0 }
 0x4fb   :  { %731 = vmatprep.mubr.msk.f32.mxu1 %vm787_vm1, %v786_v4  ;;  %724 = vmatpush3.msra.mxu1 %v496_v12 }
 0x4fc   :  { %725 = vmatprep.subr.mxu1 %v786_v4 }
 0x4fd   :  { %726 = vmatpush3.msra.mxu1 %v495_v13 }
 0x4fe   :  { %727 = vmatprep.subr.mxu1 %v786_v4 }
 0x4ff   :  { %728 = vmatpush3.msra.mxu1 %v494_v14 }
 0x500   :  { %729 = vmatprep.subr.mxu1 %v786_v4 }
 0x501   :  { %730 = vmatpush3.msra.mxu1 %v493_v15 }
 0x5ba   :  { %v437_v2 = vpop.f32.mrf.mxu1 }
 0x5bb   :  { %v443_v3 = vadd.f32 %v437_v2, %v140_v1 }
 0x5bc   :  { %v713_v5 = vpop.f32.mrf.mxu1 }
 0x5bd   :  { %756 = vtanh.f32 %v443_v3 }
 0x5be   :  { %v440_v6 = vpop.f32.mrf.mxu1 }
 0x5c0   :  { %v714_v8 = vpop.f32.mrf.mxu1 }
 0x5ca   :  { %v757_v9 = vpop.eup %756 }
 0x5cb   :  { %v446_v10 = vpack.c.bf16 %v757_v9, %v757_v9  ;;  %v445_v11 = vadd.f32 %v757_v9, %v398_v63 }
 0x5cd   :  { %720 = vmatmul.mubr.msk.bf16.vlgmr.msra.gmra.mxu0 %vm164_vm2, %v446_v10 }
 0x68d   :  { %v484_v17 = vpop.f32.mrf.mxu0 }
 0x68e   :  { %v490_v18 = vadd.f32 %v484_v17, %v143_v16 }
 0x68f   :  { %v721_v19 = vpop.f32.mrf.mxu0 }
 0x690   :  { %758 = vtanh.f32 %v490_v18 }
 0x691   :  { %v487_v20 = vpop.f32.mrf.mxu0 }
 0x693   :  { %v722_v21 = vpop.f32.mrf.mxu0 }
 0x69d   :  { %v759_v22 = vpop.eup %758 }
 0x69e   :  { %v492_v23 = vadd.f32 %v759_v22, %v445_v11 }
 0x6a0   :  { %732 = vmatmul.mubr.msk.f32.vlgmr.msra.gmra.mxu1 %vm164_vm2, %v492_v23 }
 0x760   :  { %v573_v25 = vpop.f32.mrf.mxu1 }
 0x761   :  { %v574_v4 = vadd.f32 %v624_v24, %v573_v25 }
 0x762   :  { %v733_v26 = vpop.f32.mrf.mxu1 }
 0x763   :  { %v578_v7 = vsel %vm577_vm3, %v574_v4, -inf }
 0x764   :  { %579 = vmax.xlane.f32.xlu0 %v578_v7 }
 0x7ed   :  { %v580_v27 = vpop.xlane.xlu0 %579 }
 0x7ee   :  { %v581_v28 = vsub.f32 %v574_v4, %v580_v27 }
 0x7f0   :  { %v582_v29 = vmul.f32 1.442695, %v581_v28 }
 0x7f2   :  { %760 = vpow2.f32 %v582_v29 }
 0x7ff   :  { %v761_v30 = vpop.eup %760 }
 0x800   :  { %v584_v31 = vsel %vm577_vm3, %v761_v30, 0.0 }
 0x801   :  { %585 = vadd.xlane.f32.xlu0 %v584_v31 }
 0x88a   :  { %v586_v32 = vpop.xlane.xlu0 %585 }
 0x88b   :  { %762 = vlog2.f32 %v586_v32 }
 0x898   :  { %v763_v33 = vpop.eup %762 }
 0x899   :  { %v588_v34 = vmul.f32 0.6931472, %v763_v33 }
 0x89b   :  { %v589_v35 = vsub.f32 %v581_v28, %v588_v34 }
 0x89d   :  { %590 = vst.msk [vmem:[#allocation2] sm:$0xff] %vm577_vm3, %v589_v35 }
 0x89e   :  { %775 = shalt.err (!%p772_p4)
}
 0x89f   :  { %600 = dma.vmem_to_hbm [thread:$0]  %s598_s5, 128, %s952_s6, [#allocation3]  }
 0x8a0   :  { %784 = dma.done.wait [#allocation3], 128  }
 0x8a1   :  { %785 = vsyncadd [#allocation3], 4294967168 }
 0x8a2   :  { %604 = vsyncpa [#allocation3], 1 }

</bundles_post_ra>
